<compile_context>
chip_gen: v7x
topology: tpu7x:2x2x1
jax: 0.10.0
libtpu: 0.0.40
codegen_flags: <defaults>
</compile_context>

<pallas_src>
import functools

import jax
import jax.numpy as jnp
from jax.experimental import pallas as pl
from jax.experimental.pallas import tpu as pltpu

NUM_INPUTS = 2
NUM_HIDDEN = 8
NUM_OUTPUTS = 1
BITS = 16
LANE = 128


# ---------------------------------------------------------------------------
# Host-side (wrapper) quantization helpers
# ---------------------------------------------------------------------------
def _fq_signed(v, bits, narrow=False):
    """Symmetric signed per-tensor fake-quant: scale -> round -> clamp -> dequant."""
    qmax = 2.0 ** (bits - 1) - 1.0
    qmin = -qmax if narrow else -(qmax + 1.0)
    s = jnp.max(jnp.abs(v)) / qmax
    s = jnp.where(s > 0.0, s, 1.0)
    return jnp.clip(jnp.round(v / s), qmin, qmax) * s


def _calibrate_scales(x, w1q, b1, w2q, b2):
    """Per-tensor activation scales over the FULL (unpadded) batch.

    Pure-JAX shadow of the kernel math so that tiling the batch inside the
    Pallas kernel does not change the per-tensor quantization semantics.
    Returns scalars (s_x, s_h, s_y).
    """
    qmax_s = 2.0 ** (BITS - 1) - 1.0
    qmin_s = -(qmax_s + 1.0)
    qmax_u = 2.0 ** BITS - 1.0

    s_x = jnp.max(jnp.abs(x)) / qmax_s
    s_x = jnp.where(s_x > 0.0, s_x, 1.0)
    xq = jnp.clip(jnp.round(x / s_x), qmin_s, qmax_s) * s_x

    h = jnp.maximum(xq @ w1q + b1, 0.0)
    s_h = jnp.max(h) / qmax_u
    s_h = jnp.where(s_h > 0.0, s_h, 1.0)
    hq = jnp.clip(jnp.round(h / s_h), 0.0, qmax_u) * s_h

    y = jnp.maximum(hq @ w2q + b2, 0.0)
    s_y = jnp.max(y) / qmax_u
    s_y = jnp.where(s_y > 0.0, s_y, 1.0)
    return s_x, s_h, s_y


def _round_up(n, m):
    return ((n + m - 1) // m) * m


# ---------------------------------------------------------------------------
# Pallas kernel (one batch tile per grid step, batch on the lane axis)
# ---------------------------------------------------------------------------
def quantnet_kernel(scales_ref, x_ref, params_ref, o_ref):
    qmax_s = 2.0 ** (BITS - 1) - 1.0      # 32767
    qmin_s = -(qmax_s + 1.0)              # -32768
    qmax_u = 2.0 ** BITS - 1.0            # 65535

    s_x, s_h, s_y = scales_ref[0], scales_ref[1], scales_ref[2]
    r_x, r_h, r_y = scales_ref[3], scales_ref[4], scales_ref[5]
    b2 = scales_ref[6]

    # --- QuantIdentity(16b): signed fake-quant with the global per-tensor scale ---
    xq = jnp.clip(jnp.round(x_ref[...] * r_x), qmin_s, qmax_s) * s_x        # (2, TB)

    # --- QuantLinear(2 -> 8): weights pre-fake-quantized in the wrapper.
    #     K=2 -> two VPU broadcast FMAs; no MXU needed.
    w1c0 = params_ref[:, 0:1]                                               # (8, 1)
    w1c1 = params_ref[:, 1:2]                                               # (8, 1)
    b1 = params_ref[:, 2:3]                                                 # (8, 1)
    w2 = params_ref[:, 3:4]                                                 # (8, 1)
    h = w1c0 * xq[0:1, :] + w1c1 * xq[1:2, :] + b1                          # (8, TB)

    # --- QuantReLU(16b): unsigned fake-quant with the global per-tensor scale ---
    h = jnp.maximum(h, 0.0)
    h = jnp.clip(jnp.round(h * r_h), 0.0, qmax_u) * s_h

    # --- QuantLinear(8 -> 1): K=8, N=1 -> broadcast multiply + sublane reduce ---
    y = jnp.sum(h * w2, axis=0, keepdims=True) + b2                         # (1, TB)

    # --- QuantReLU(16b) ---
    y = jnp.maximum(y, 0.0)
    o_ref[...] = jnp.clip(jnp.round(y * r_y), 0.0, qmax_u) * s_y


# ---------------------------------------------------------------------------
# Wrapper
# ---------------------------------------------------------------------------
@functools.partial(jax.jit, static_argnames=("block_b",))
def quantnet_forward(x, w1, b1, w2, b2, scales=None, *, block_b=2048):
    """x: (B, 2); w1: (2, 8); b1: (1, 8); w2: (8, 1); b2: (1, 1).  Returns (B, 1).

    scales: optional (3,) array [s_x, s_h, s_y] of learned per-tensor activation
    scales; if None they are calibrated from the batch (Brevitas emulation).
    """
    B = x.shape[0]
    x = x.astype(jnp.float32)

    # Weight fake-quant is data-independent of x -> hoisted out of the tile loop.
    w1q = _fq_signed(w1.astype(jnp.float32), BITS, narrow=True)             # (2, 8)
    w2q = _fq_signed(w2.astype(jnp.float32), BITS, narrow=True)             # (8, 1)
    b1f = b1.astype(jnp.float32).reshape(NUM_HIDDEN)                        # (8,)
    b2f = b2.astype(jnp.float32).reshape(())                                # ()

    if scales is None:
        s_x, s_h, s_y = _calibrate_scales(x, w1q, b1f, w2q, b2f)
    else:
        s_x = scales[0].astype(jnp.float32)
        s_h = scales[1].astype(jnp.float32)
        s_y = scales[2].astype(jnp.float32)

    # Per-tensor scalars (scales, reciprocals, b2) -> one small SMEM vector.
    scale_vec = jnp.stack(
        [s_x, s_h, s_y, 1.0 / s_x, 1.0 / s_h, 1.0 / s_y, b2f,
         jnp.float32(0.0)]).astype(jnp.float32)                             # (8,)

    # All layer parameters packed into one (8, 4) VMEM block, DMA'd exactly once:
    # columns = [w1[:,0] | w1[:,1] | b1 | w2]  (each length NUM_HIDDEN=8).
    params = jnp.stack(
        [w1q[0], w1q[1], b1f, w2q.reshape(NUM_HIDDEN)], axis=1
    ).astype(jnp.float32)                                                   # (8, 4)

    # Lane-dense layout: batch on the 128-lane axis, padded to the tile size.
    tb = max(LANE, min(_round_up(block_b, LANE), _round_up(B, LANE)))
    b_pad = _round_up(B, tb)
    n_tiles = b_pad // tb
    x_t = jnp.zeros((NUM_INPUTS, b_pad), jnp.float32).at[:, :B].set(x.T)    # (2, Bp)

    out_t = pl.pallas_call(
        quantnet_kernel,
        out_shape=jax.ShapeDtypeStruct((NUM_OUTPUTS, b_pad), jnp.float32),
        grid_spec=pltpu.PrefetchScalarGridSpec(
            num_scalar_prefetch=0,
            grid=(n_tiles,),
            in_specs=[
                pl.BlockSpec(memory_space=pltpu.MemorySpace.SMEM),          # scales
                pl.BlockSpec((NUM_INPUTS, tb), lambda i: (0, i)),           # x tile
                pl.BlockSpec((NUM_HIDDEN, 4), lambda i: (0, 0)),            # params
            ],
            out_specs=pl.BlockSpec((NUM_OUTPUTS, tb), lambda i: (0, i)),
        ),
        compiler_params=pltpu.CompilerParams(
            dimension_semantics=("parallel",),
        ),
    )(scale_vec, x_t, params)

    # Back to the module's (B, 1) layout; drop batch padding.
    return out_t[0, :B][:, None]


# ---------------------------------------------------------------------------
# Pure-JAX reference (same math, for a numerical sanity check)
# ---------------------------------------------------------------------------
def _reference_forward(x, w1, b1, w2, b2):
    x = x.astype(jnp.float32)
    w1q = _fq_signed(w1.astype(jnp.float32), BITS, narrow=True)
    w2q = _fq_signed(w2.astype(jnp.float32), BITS, narrow=True)
    b1f = b1.astype(jnp.float32).reshape(NUM_HIDDEN)
    b2f = b2.astype(jnp.float32).reshape(())
    s_x, s_h, s_y = _calibrate_scales(x, w1q, b1f, w2q, b2f)

    qmax_s = 2.0 ** (BITS - 1) - 1.0
    qmin_s = -(qmax_s + 1.0)
    qmax_u = 2.0 ** BITS - 1.0

    xq = jnp.clip(jnp.round(x / s_x), qmin_s, qmax_s) * s_x
    h = jnp.maximum(xq @ w1q + b1f, 0.0)
    h = jnp.clip(jnp.round(h / s_h), 0.0, qmax_u) * s_h
    y = jnp.maximum(h @ w2q + b2f, 0.0)
    return jnp.clip(jnp.round(y / s_y), 0.0, qmax_u) * s_y


def init_params(key):
    """Deterministic PyTorch-style Linear init: U(-1/sqrt(fan_in), 1/sqrt(fan_in))."""
    k1, k2, k3, k4 = jax.random.split(key, 4)
    lim1 = 1.0 / jnp.sqrt(float(NUM_INPUTS))
    lim2 = 1.0 / jnp.sqrt(float(NUM_HIDDEN))
    # stored (in_features, out_features): the math is x @ W
    w1 = jax.random.uniform(k1, (NUM_INPUTS, NUM_HIDDEN), jnp.float32, -lim1, lim1)
    b1 = jax.random.uniform(k2, (1, NUM_HIDDEN), jnp.float32, -lim1, lim1)
    w2 = jax.random.uniform(k3, (NUM_HIDDEN, NUM_OUTPUTS), jnp.float32, -lim2, lim2)
    b2 = jax.random.uniform(k4, (1, NUM_OUTPUTS), jnp.float32, -lim2, lim2)
    return w1, b1, w2, b2


if __name__ == "__main__":
    key = jax.random.PRNGKey(0)
    k_x, k_p = jax.random.split(key)
    batch = 8
    x = jax.random.normal(k_x, (batch, NUM_INPUTS), jnp.float32)
    w1, b1, w2, b2 = init_params(k_p)

    out = quantnet_forward(x, w1, b1, w2, b2)
    jax.block_until_ready(out)

    ref = _reference_forward(x, w1, b1, w2, b2)
    assert out.shape == (batch, NUM_OUTPUTS)
    assert bool(jnp.all(jnp.isfinite(out)))
    assert bool(jnp.allclose(out, ref, atol=1e-3, rtol=1e-3)), "mismatch vs reference"
    print("KERNEL_OK")
</pallas_src>

<mosaic_0001>
module attributes {stable_mosaic.version = 11 : i64} {
  func.func @quantnet_kernel(%arg0: i32, %arg1: memref<8xf32, #tpu.memory_space<smem>>, %arg2: memref<2x128xf32, #tpu.memory_space<vmem>>, %arg3: memref<8x4xf32, #tpu.memory_space<vmem>>, %arg4: memref<1x128xf32, #tpu.memory_space<vmem>>) attributes {dimension_semantics = [#tpu.dimension_semantics<parallel>], iteration_bounds = array<i64: 1>, scalar_prefetch = 0 : i64, scratch_operands = 0 : i64, tpu.core_type = #tpu.core_type<tc>, window_params = [{transform_indices = @transform_0, window_bounds = array<i64: 8>}, {transform_indices = @transform_1, window_bounds = array<i64: 2, 128>}, {pipeline_mode = #tpu.pipeline_mode<synchronous>, transform_indices = @transform_2, window_bounds = array<i64: 8, 4>}, {transform_indices = @transform_3, window_bounds = array<i64: 1, 128>}]} {
    %c0 = arith.constant 0 : index
    %0 = memref.load %arg1[%c0] : memref<8xf32, #tpu.memory_space<smem>>
    %c1 = arith.constant 1 : index
    %1 = memref.load %arg1[%c1] : memref<8xf32, #tpu.memory_space<smem>>
    %c2 = arith.constant 2 : index
    %2 = memref.load %arg1[%c2] : memref<8xf32, #tpu.memory_space<smem>>
    %c3 = arith.constant 3 : index
    %3 = memref.load %arg1[%c3] : memref<8xf32, #tpu.memory_space<smem>>
    %c4 = arith.constant 4 : index
    %4 = memref.load %arg1[%c4] : memref<8xf32, #tpu.memory_space<smem>>
    %c5 = arith.constant 5 : index
    %5 = memref.load %arg1[%c5] : memref<8xf32, #tpu.memory_space<smem>>
    %c6 = arith.constant 6 : index
    %6 = memref.load %arg1[%c6] : memref<8xf32, #tpu.memory_space<smem>>
    %c0_0 = arith.constant 0 : index
    %c0_1 = arith.constant 0 : index
    %7 = vector.load %arg2[%c0_0, %c0_1] : memref<2x128xf32, #tpu.memory_space<vmem>>, vector<2x128xf32>
    %8 = vector.broadcast %3 : f32 to vector<2x128xf32>
    %9 = arith.mulf %7, %8 : vector<2x128xf32>
    %10 = math.roundeven %9 : vector<2x128xf32>
    %cst = arith.constant -3.276800e+04 : f32
    %cst_2 = arith.constant 3.276700e+04 : f32
    %11 = vector.broadcast %cst : f32 to vector<2x128xf32>
    %12 = arith.maximumf %11, %10 : vector<2x128xf32>
    %13 = vector.broadcast %cst_2 : f32 to vector<2x128xf32>
    %14 = arith.minimumf %13, %12 : vector<2x128xf32>
    %15 = vector.broadcast %0 : f32 to vector<2x128xf32>
    %16 = arith.mulf %14, %15 : vector<2x128xf32>
    %c0_3 = arith.constant 0 : index
    %c0_4 = arith.constant 0 : index
    %17 = vector.load %arg3[%c0_3, %c0_4] : memref<8x4xf32, #tpu.memory_space<vmem>>, vector<8x1xf32>
    %c0_5 = arith.constant 0 : index
    %c1_6 = arith.constant 1 : index
    %18 = vector.load %arg3[%c0_5, %c1_6] : memref<8x4xf32, #tpu.memory_space<vmem>>, vector<8x1xf32>
    %c0_7 = arith.constant 0 : index
    %c2_8 = arith.constant 2 : index
    %19 = vector.load %arg3[%c0_7, %c2_8] : memref<8x4xf32, #tpu.memory_space<vmem>>, vector<8x1xf32>
    %c0_9 = arith.constant 0 : index
    %c3_10 = arith.constant 3 : index
    %20 = vector.load %arg3[%c0_9, %c3_10] : memref<8x4xf32, #tpu.memory_space<vmem>>, vector<8x1xf32>
    %21 = vector.extract_strided_slice %16 {offsets = [0, 0], sizes = [1, 128], strides = [1, 1]} : vector<2x128xf32> to vector<1x128xf32>
    %22 = vector.broadcast %17 : vector<8x1xf32> to vector<8x128xf32>
    %23 = vector.broadcast %21 : vector<1x128xf32> to vector<8x128xf32>
    %24 = arith.mulf %22, %23 : vector<8x128xf32>
    %25 = vector.extract_strided_slice %16 {offsets = [1, 0], sizes = [1, 128], strides = [1, 1]} : vector<2x128xf32> to vector<1x128xf32>
    %26 = vector.broadcast %18 : vector<8x1xf32> to vector<8x128xf32>
    %27 = vector.broadcast %25 : vector<1x128xf32> to vector<8x128xf32>
    %28 = arith.mulf %26, %27 : vector<8x128xf32>
    %29 = arith.addf %24, %28 : vector<8x128xf32>
    %30 = vector.broadcast %19 : vector<8x1xf32> to vector<8x128xf32>
    %31 = arith.addf %29, %30 : vector<8x128xf32>
    %cst_11 = arith.constant 0.000000e+00 : f32
    %32 = vector.broadcast %cst_11 : f32 to vector<8x128xf32>
    %33 = arith.maximumf %31, %32 : vector<8x128xf32>
    %34 = vector.broadcast %4 : f32 to vector<8x128xf32>
    %35 = arith.mulf %33, %34 : vector<8x128xf32>
    %36 = math.roundeven %35 : vector<8x128xf32>
    %cst_12 = arith.constant 0.000000e+00 : f32
    %cst_13 = arith.constant 6.553500e+04 : f32
    %37 = vector.broadcast %cst_12 : f32 to vector<8x128xf32>
    %38 = arith.maximumf %37, %36 : vector<8x128xf32>
    %39 = vector.broadcast %cst_13 : f32 to vector<8x128xf32>
    %40 = arith.minimumf %39, %38 : vector<8x128xf32>
    %41 = vector.broadcast %1 : f32 to vector<8x128xf32>
    %42 = arith.mulf %40, %41 : vector<8x128xf32>
    %43 = vector.broadcast %20 : vector<8x1xf32> to vector<8x128xf32>
    %44 = arith.mulf %42, %43 : vector<8x128xf32>
    %cst_14 = arith.constant dense<0.000000e+00> : vector<128xf32>
    %45 = vector.multi_reduction <add>, %44, %cst_14 [0] : vector<8x128xf32> to vector<128xf32>
    %46 = vector.shape_cast %45 : vector<128xf32> to vector<1x128xf32>
    %47 = vector.broadcast %6 : f32 to vector<1x128xf32>
    %48 = arith.addf %46, %47 : vector<1x128xf32>
    %cst_15 = arith.constant 0.000000e+00 : f32
    %49 = vector.broadcast %cst_15 : f32 to vector<1x128xf32>
    %50 = arith.maximumf %48, %49 : vector<1x128xf32>
    %51 = vector.broadcast %5 : f32 to vector<1x128xf32>
    %52 = arith.mulf %50, %51 : vector<1x128xf32>
    %53 = math.roundeven %52 : vector<1x128xf32>
    %cst_16 = arith.constant 0.000000e+00 : f32
    %cst_17 = arith.constant 6.553500e+04 : f32
    %54 = vector.broadcast %cst_16 : f32 to vector<1x128xf32>
    %55 = arith.maximumf %54, %53 : vector<1x128xf32>
    %56 = vector.broadcast %cst_17 : f32 to vector<1x128xf32>
    %57 = arith.minimumf %56, %55 : vector<1x128xf32>
    %58 = vector.broadcast %2 : f32 to vector<1x128xf32>
    %59 = arith.mulf %57, %58 : vector<1x128xf32>
    %c0_18 = arith.constant 0 : index
    %c0_19 = arith.constant 0 : index
    %60 = vector.load %arg4[%c0_18, %c0_19] : memref<1x128xf32, #tpu.memory_space<vmem>>, vector<1x128xf32>
    tpu.vector_store %arg4[%c0_18, %c0_19], %59 {strides = array<i32>} : memref<1x128xf32, #tpu.memory_space<vmem>>, vector<1x128xf32>,
    return
  }
  func.func @transform_0(%arg0: i32) -> i32 {
    %c0_i32 = arith.constant 0 : i32
    %c0_i32_0 = arith.constant 0 : i32
    return %c0_i32 : i32
  }
  func.func @transform_1(%arg0: i32) -> (i32, i32) {
    %c0_i32 = arith.constant 0 : i32
    %c0_i32_0 = arith.constant 0 : i32
    return %c0_i32, %arg0 : i32, i32
  }
  func.func @transform_2(%arg0: i32) -> (i32, i32) {
    %c0_i32 = arith.constant 0 : i32
    %c0_i32_0 = arith.constant 0 : i32
    %c0_i32_1 = arith.constant 0 : i32
    return %c0_i32, %c0_i32_0 : i32, i32
  }
  func.func @transform_3(%arg0: i32) -> (i32, i32) {
    %c0_i32 = arith.constant 0 : i32
    %c0_i32_0 = arith.constant 0 : i32
    return %c0_i32, %arg0 : i32, i32
  }
}

</mosaic_0001>

<bundles_post_ra>
// kernel: quantnet_forward.1
= control target key start
LH: loop header
LB: loop body
LE: loop exit
PB: predicated region body
PF: predicated region fallthrough
CT: control target
= control target key end

     0   :  { %8 = vsyncpa [#allocation3], 0  ;;  %s173_s0 = inlined_call_operand.vmem [shape: f32[8], index: 0, kind: input, shape index: {}]   ;;  %s174_s1 = inlined_call_operand.vmem [shape: f32[2,128], index: 1, kind: input, shape index: {}]   ;;  %s175_s2 = inlined_call_operand.vmem [shape: f32[8,4], index: 2, kind: input, shape index: {}]   ;;  %s176_s3 = inlined_call_operand.vmem [shape: f32[1,128], index: 3, kind: output, shape index: {}]  }
   0x1   :  { %s15_s14 = sshll.u32 %s173_s0, 4  ;;  %s16_s14 = int_to_ptr.vmem [resolvable:$true] %s15_s14 }
   0x2   :  { %s122_s15 = scalar_lea.vmem %s16_s14, 16  ;;  %p127_p1 = scmp.lt.s32.totalorder %s16_s14, %s16_s14 }
   0x3   :  { %p123_p0 = scmp.ne.s32.totalorder %s16_s14, %s122_s15  ;;  %p128_p2 = scmp.lt.s32.totalorder %s122_s15, %s122_s15 }
   0x5   :  { %p129_p3 = por %p128_p2, %p127_p1 }
   0x7   :  { %p130_p4 = pnand %p129_p3, %p123_p0 }
   0x9   :  { %133 = shalt.err (!%p130_p4)
}
   0xa   :  { %s136_s16 = smov [#allocation2]  }
   0xb   :  { %18 = dma.vmem_to_smem %s16_s14, 16, %s136_s16, [#allocation3]  }
   0xc   :  { %134 = dma.done.wait [#allocation3], 16  }
   0xd   :  { %135 = vsyncadd [#allocation3], 4294967280 }
   0xe   :  { %26 = sfence }
   0xf   :  { %v42_v0 = vld [vmem:[%s175_s2] sm:$0xff]  ;;  %v137_v1 = vmov 0   ;;  %v138_v2 = vmov 2   ;;  %v139_v3 = vmov 1   ;;  %v140_v4 = vmov 3   ;;  %s105_s0 = sld [smem:[#allocation2 + $0x3]] }
  0x10   :  { %117 = vset.pattern.permute.xlu0 %v137_v1  ;;  %119 = vset.pattern.permute.xlu1 %v138_v2  ;;  %v34_v5 = vld [vmem:[%s174_s1] sm:$0x3]  ;;  %s27_s2 = sld [smem:[#allocation2]]  ;;  %v48_v9 = vlaneseq  ;;  %s106_s21 = sld [smem:[#allocation2 + $0x4]] }
  0x11   :  { %45 = vperm.xlu0 %117, %v42_v0   ;;  %64 = vperm.xlu1 %119, %v42_v0   ;;  %s103_s1 = sld [smem:[#allocation2 + $0x1]]  ;;  %s108_s22 = sld [smem:[#allocation2 + $0x6]] }
  0x12   :  { %v49_v11 = vshrl.u32 %v48_v9, 7  ;;  %s107_s23 = sld [smem:[#allocation2 + $0x5]]  ;;  %s104_s24 = sld [smem:[#allocation2 + $0x2]] }
  0x14   :  { %v50_v14 = vsub.s32 0, %v49_v11  ;;  %v59_v16 = vsub.s32 1, %v49_v11 }
  0x15   :  { %118 = vset.pattern.permute.xlu0 %v139_v3  ;;  %120 = vset.pattern.permute.xlu1 %v140_v4  ;;  %v35_v6 = vstv %s105_s0 }
  0x16   :  { %54 = vperm.xlu0 %118, %v42_v0   ;;  %77 = vperm.xlu1 %120, %v42_v0   ;;  %v36_v7 = vmul.f32 %v35_v6, %v34_v5  ;;  %v40_v13 = vstv %s27_s2  ;;  %v69_v26 = vstv %s106_s21 }
  0x17   :  { %v74_v31 = vstv %s103_s1  ;;  %v87_v41 = vstv %s108_s22 }
  0x18   :  { %v109_v8 = vround.rtne.f32 %v36_v7  ;;  %v90_v44 = vstv %s107_s23  ;;  %v95_v49 = vstv %s104_s24 }
  0x1a   :  { %121 = vset.pattern.permute.xlu0 %v140_v4  ;;  %v38_v10 = vmax.f32 %v109_v8, -32768.0 }
  0x1c   :  { %v39_v12 = vmin.f32 %v38_v10, 32767.0 }
  0x1e   :  { %v41_v15 = vmul.f32 %v40_v13, %v39_v12 }
  0x20   :  { %v51_v18 = vrot.slane %v41_v15, %v50_v14  ;;  %v60_v19 = vrot.slane %v41_v15, %v59_v16 }
  0x90   :  { %v46_v17 = vpop.permute.xlu0 %45  ;;  %v65_v23 = vpop.permute.xlu1 %64 }
  0x91   :  { %v52_v21 = vmul.f32 %v51_v18, %v46_v17 }
  0x95   :  { %v55_v20 = vpop.permute.xlu0 %54  ;;  %v78_v33 = vpop.permute.xlu1 %77 }
  0x96   :  { %v61_v22 = vmul.f32 %v60_v19, %v55_v20 }
  0x98   :  { %v62_v24 = vadd.f32 %v61_v22, %v52_v21 }
  0x9a   :  { %v67_v25 = vadd.f32 %v65_v23, %v62_v24 }
  0x9c   :  { %v68_v27 = vmax.f32 %v67_v25, 0.0 }
  0x9e   :  { %v70_v28 = vmul.f32 %v69_v26, %v68_v27 }
  0xa0   :  { %v110_v29 = vround.rtne.f32 %v70_v28 }
  0xa2   :  { %v72_v30 = vmax.f32 %v110_v29, 0.0 }
  0xa4   :  { %v73_v32 = vmin.f32 %v72_v30, 65535.0 }
  0xa6   :  { %v75_v34 = vmul.f32 %v74_v31, %v73_v32 }
  0xa8   :  { %v80_v35 = vmul.f32 %v78_v33, %v75_v34 }
  0xaa   :  { %v81_v36 = vrot.slane %v80_v35, 4 }
  0xac   :  { %v82_v37 = vadd.f32 %v81_v36, %v80_v35 }
  0xae   :  { %v83_v38 = vrot.slane %v82_v37, 2 }
  0xb0   :  { %v84_v39 = vadd.f32 %v83_v38, %v82_v37 }
  0xb2   :  { %v85_v40 = vrot.slane %v84_v39, 1 }
  0xb4   :  { %v86_v42 = vadd.f32 %v85_v40, %v84_v39 }
  0xb6   :  { %v88_v43 = vadd.f32 %v87_v41, %v86_v42 }
  0xb8   :  { %v89_v45 = vmax.f32 %v88_v43, 0.0 }
  0xba   :  { %v91_v46 = vmul.f32 %v90_v44, %v89_v45 }
  0xbc   :  { %v111_v47 = vround.rtne.f32 %v91_v46 }
  0xbe   :  { %v93_v48 = vmax.f32 %v111_v47, 0.0 }
  0xc0   :  { %v94_v50 = vmin.f32 %v93_v48, 65535.0 }
  0xc2   :  { %v96_v51 = vmul.f32 %v95_v49, %v94_v50 }
  0xc4   :  { %97 = vst [vmem:[%s176_s3] sm:$0x1] %v96_v51 }
  0xc5   :  { %102 = vsyncpa [#allocation3], 1 }

</bundles_post_ra>
